<compile_context>
chip_gen: v6e
topology: v6e:2x2x1
jax: 0.10.0
libtpu: 0.0.40
codegen_flags: <defaults>
</compile_context>

<pallas_src>
import numpy as np

import jax
import jax.numpy as jnp
from jax.experimental import pallas as pl
from jax.experimental.pallas import tpu as pltpu


# ----------------------------------------------------------------------------
# Kernel body: identity copy — the channel-half swap lives in the index maps.
# ----------------------------------------------------------------------------
def _channel_switch_kernel(x_ref, o_ref):
    # x_ref / o_ref: (B_tile, 1, R_tile, L) VMEM blocks.
    o_ref[...] = x_ref[...]


# ----------------------------------------------------------------------------
# Tiling helpers
# ----------------------------------------------------------------------------
def _factor_slab(n, half, hw, pack, lane_cap=32768):
    """Factor the per-(batch, half) slab of n = half*hw elements into (R, L).

    Prefers L = a multiple of 128 dividing n (lane-dense, unmasked stores) with
    R = n // L >= pack (full sublane packing).  Falls back to the natural
    (half, hw) factorization (full-extent last dim -> still legal, just masked)
    when n is not a multiple of 128.
    """
    if n % 128 == 0:
        cap = max(128, min(n // max(pack, 1), lane_cap))
        cap = (cap // 128) * 128
        for cand in range(cap, 127, -128):
            if n % cand == 0:
                return n // cand, cand
        return n // 128, 128  # unreachable: 128 divides n
    return half, hw


def _largest_divisor_leq(n, cap):
    cap = max(1, min(n, cap))
    for d in range(cap, 0, -1):
        if n % d == 0:
            return d
    return 1


# ----------------------------------------------------------------------------
# Wrapper
# ----------------------------------------------------------------------------
def channel_switcher(x, *, target_block_bytes=4 << 20):
    """x: (B, C, H, W). Returns concat([x[:, C//2:], x[:, :C//2]], axis=1)."""
    B, C, H, W = x.shape
    assert C % 2 == 0, "ChannelSwitcher requires an even channel count"
    half = C // 2
    hw = H * W
    n = half * hw                          # elements per (batch, half) slab
    itemsize = jnp.dtype(x.dtype).itemsize
    pack = max(8, 32 // itemsize)          # sublane pack: 8 f32 / 16 bf16 / 32 i8

    # ---- lane-dense, freely tileable view (B, 2, R, L) ---------------------
    R, L = _factor_slab(n, half, hw, pack)
    x4 = x.reshape(B, 2, R, L)             # contiguous -> free reshape

    # ---- tile R (sublane axis) toward the per-buffer byte target -----------
    row_bytes = L * itemsize
    rows_fit = max(1, target_block_bytes // row_bytes)
    if rows_fit >= R:
        r_tile = R                          # full extent (always legal)
    else:
        r_tile = max(pack, (rows_fit // pack) * pack)   # multiple of 8
        r_tile = min(r_tile, R)
    nr = pl.cdiv(R, r_tile)

    # ---- when one slab is small, grow the block across the batch axis ------
    if r_tile >= R and nr == 1:
        slab_bytes = max(1, R * L * itemsize)
        b_tile = _largest_divisor_leq(B, max(1, target_block_bytes // slab_bytes))
    else:
        b_tile = 1
    nb = B // b_tile

    block = (b_tile, 1, r_tile, L)
    block_bytes = b_tile * r_tile * L * itemsize
    # 2x-in + 2x-out double-buffered blocks (+1 MiB slack); >= 32 MiB raises
    # v5e's default, <= 48 MiB keeps headroom under v7x's 64 MiB physical VMEM.
    vmem_limit = int(min(max(32 << 20, 4 * block_bytes + (1 << 20)), 48 << 20))

    out4 = pl.pallas_call(
        _channel_switch_kernel,
        out_shape=jax.ShapeDtypeStruct((B, 2, R, L), x.dtype),
        # Lead with the always-even group axis -> balanced megacore split.
        grid=(2, nb, nr),
        in_specs=[
            # Output group g is fed from input group 1 - g  ->  the swap.
            pl.BlockSpec(block, lambda g, b, r: (b, 1 - g, r, 0)),
        ],
        out_specs=pl.BlockSpec(block, lambda g, b, r: (b, g, r, 0)),
        compiler_params=pltpu.CompilerParams(
            dimension_semantics=("parallel", "parallel", "parallel"),
            vmem_limit_bytes=vmem_limit,
        ),
        cost_estimate=pl.CostEstimate(
            flops=0,
            transcendentals=0,
            bytes_accessed=2 * int(x.size) * itemsize,
        ),
    )(x4)

    return out4.reshape(B, C, H, W)


# ----------------------------------------------------------------------------
if __name__ == "__main__":
    def _ref(a):
        h = a.shape[1] // 2
        return jnp.concatenate([a[:, h:], a[:, :h]], axis=1)

    # Primary small example consistent with the module: (batch=2, channels=4, 16x16).
    key = jax.random.PRNGKey(0)
    x = jax.random.normal(key, (2, 4, 16, 16), dtype=jnp.float32)
    out = jax.block_until_ready(channel_switcher(x))
    np.testing.assert_allclose(np.asarray(out), np.asarray(_ref(x)), rtol=0, atol=0)

    # Extra shapes exercising the pack-aligned tiling and the HW%128!=0 fallback.
    for shape in [(3, 16, 8, 16), (2, 6, 5, 5)]:
        key, sub = jax.random.split(key)
        x2 = jax.random.normal(sub, shape, dtype=jnp.float32)
        out2 = jax.block_until_ready(channel_switcher(x2))
        np.testing.assert_allclose(np.asarray(out2), np.asarray(_ref(x2)), rtol=0, atol=0)

    print("KERNEL_OK")
</pallas_src>

<mosaic_0001>
module attributes {stable_mosaic.version = 11 : i64} {
  func.func @_channel_switch_kernel(%arg0: i32, %arg1: i32, %arg2: i32, %arg3: memref<2x1x4x128xf32, #tpu.memory_space<vmem>>, %arg4: memref<2x1x4x128xf32, #tpu.memory_space<vmem>>) attributes {dimension_semantics = [#tpu.dimension_semantics<parallel>, #tpu.dimension_semantics<parallel>, #tpu.dimension_semantics<parallel>], iteration_bounds = array<i64: 2, 1, 1>, scalar_prefetch = 0 : i64, scratch_operands = 0 : i64, tpu.core_type = #tpu.core_type<tc>, window_params = [{transform_indices = @transform_0, window_bounds = array<i64: 2, 1, 4, 128>}, {transform_indices = @transform_1, window_bounds = array<i64: 2, 1, 4, 128>}]} {
    %c0 = arith.constant 0 : index
    %c0_0 = arith.constant 0 : index
    %c0_1 = arith.constant 0 : index
    %c0_2 = arith.constant 0 : index
    %0 = vector.load %arg3[%c0, %c0_0, %c0_1, %c0_2] : memref<2x1x4x128xf32, #tpu.memory_space<vmem>>, vector<2x1x4x128xf32>
    %c0_3 = arith.constant 0 : index
    %c0_4 = arith.constant 0 : index
    %c0_5 = arith.constant 0 : index
    %c0_6 = arith.constant 0 : index
    %1 = vector.load %arg4[%c0_3, %c0_4, %c0_5, %c0_6] : memref<2x1x4x128xf32, #tpu.memory_space<vmem>>, vector<2x1x4x128xf32>
    tpu.vector_store %arg4[%c0_3, %c0_4, %c0_5, %c0_6], %0 {strides = array<i32>} : memref<2x1x4x128xf32, #tpu.memory_space<vmem>>, vector<2x1x4x128xf32>,
    return
  }
  func.func @transform_0(%arg0: i32, %arg1: i32, %arg2: i32) -> (i32, i32, i32, i32) {
    %c1_i32 = arith.constant 1 : i32
    %0 = arith.subi %c1_i32, %arg0 : i32
    %c0_i32 = arith.constant 0 : i32
    %c0_i32_0 = arith.constant 0 : i32
    return %arg1, %0, %arg2, %c0_i32 : i32, i32, i32, i32
  }
  func.func @transform_1(%arg0: i32, %arg1: i32, %arg2: i32) -> (i32, i32, i32, i32) {
    %c0_i32 = arith.constant 0 : i32
    %c0_i32_0 = arith.constant 0 : i32
    return %arg1, %arg0, %arg2, %c0_i32 : i32, i32, i32, i32
  }
}

</mosaic_0001>

<bundles_post_ra>
// kernel: tpu_custom_call.1
= control target key start
LH: loop header
LB: loop body
LE: loop exit
PB: predicated region body
PF: predicated region fallthrough
CT: control target
= control target key end

     0   :  { %6 = vsyncpa [#allocation3], 0  ;;  %s715_s0 = inlined_call_operand.hbm [shape: f32[2,2,4,128], index: 0, kind: input, shape index: {}]   ;;  %s716_s1 = inlined_call_operand.hbm [shape: f32[2,2,4,128], index: 1, kind: output, shape index: {}]  }
   0x1   :  { %8 = vsyncpa [#allocation3 + $0x1], 0 }
   0x2   :  { %9 = vsyncpa [#allocation4], 0 }
   0x3   :  { %11 = vsyncpa [#allocation4 + $0x1], 0  ;;  %s539_s6 = smov 0   ;;  %s541_s7 = smov 0  }
   0x4   :  { %s543_s8 = smov 0   ;;  %s545_s9 = smov 0  }
   0x5   :  { %s547_s10 = smov 0   ;;  %s549_s11 = smov 0  }
   0x6   :  { %s551_s12 = smov 0   ;;  %s553_s13 = smov 0  }
   0x7   :  { %s555_s14 = smov 0  }
   0x8 LB: > { %s282_s15 = sadd.s32 4294967295, %s519_s14   ;;  %s283_s16 = sadd.s32 4294967294, %s519_s14   ;;  %s519_s14 = sphi %s555_s14, %s17_s14   ;;  %s515_s13 = sphi %s553_s13, %s730_s13   ;;  %s511_s12 = sphi %s551_s12, %s729_s12   ;;  %s507_s11 = sphi %s549_s11, %s728_s11   ;;  %s503_s10 = sphi %s547_s10, %s727_s10   ;;  %s499_s9 = sphi %s545_s9, %s726_s9   ;;  %s495_s8 = sphi %s543_s8, %s725_s8   ;;  %s491_s7 = sphi %s541_s7, %s724_s7   ;;  %s487_s6 = sphi %s539_s6, %s723_s6  }
   0x9   : > { %s36_s17 = sadd.s32 1, %s515_s13  ;;  %s40_s18 = ssub.s32 1, %s515_s13 }
   0xa   : > { %p38_p0 = scmp.ge.s32.totalorder %s36_s17, 2  ;;  %s49_s19 = sadd.s32 1, %s507_s11 }
   0xb   : > { %p56_p1 = scmp.ne.s32.totalorder %s507_s11, %s503_s10  ;;  %p57_p2 = scmp.eq.s32.totalorder %s519_s14, 0 }
   0xc   : > { %s732_s17 = smov (%p38_p0, %s36_s17), 0  ;;  %p62_p4 = scmp.ne.s32.totalorder %s503_s10, %s499_s9 }
   0xd   : > { %p592_p3 = por %p57_p2, %p56_p1  ;;  %s41_s21 = ssub.s32 1, %s732_s17 }
   0xe   : > { %p63_p5 = scmp.eq.s32.totalorder %s282_s15, 0  ;;  %s43_s22 = ssub.s32 %s40_s18, %s41_s21 }
   0xf   : > { %s73_s23 = ssub.s32 %s515_s13, %s732_s17  ;;  %p47_p6 = scmp.eq.s32.totalorder %s43_s22, 0 }
  0x10   : > { %p600_p7 = por %p63_p5, %p62_p4  ;;  %p77_p8 = scmp.eq.s32.totalorder %s73_s23, 0 }
  0x11   : > { %s79_s25 = sadd.s32 1, %s495_s8  ;;  %p89_p9 = scmp.ne.s32.totalorder %s495_s8, %s491_s7 }
  0x12   : > { %s606_s26 = scalar_select %p47_p6, %s507_s11, %s49_s19  }
  0x13   : > { %s609_s27 = scalar_select %p77_p8, %s495_s8, %s79_s25  }
  0x14   : > { %p90_p10 = scmp.eq.s32.totalorder %s282_s15, 1  ;;  %p95_p11 = scmp.ne.s32.totalorder %s491_s7, %s487_s6 }
  0x15   : > { %p96_p12 = scmp.eq.s32.totalorder %s283_s16, 1  ;;  %p307_p2 = scmp.lt.s32.totalorder %s519_s14, 2 }
  0x16   : > { %p615_p13 = por %p90_p10, %p89_p9  ;;  %s116_s30 = sand.u32 1, %s507_s11  }
  0x17   : > { %p620_p1 = por %p96_p12, %p95_p11  ;;  %s626_s2 = sshll.u32 %s40_s18, 6 }
  0x18   : > { %s286_s3 = sshll.u32 %s116_s30, 3  ;;  %s130_s9 = scalar_lea.hbm %s715_s0, %s626_s2 }
  0x19   : > { %s120_s15 = scalar_lea.vmem [#allocation2], %s286_s3  ;;  %p634_p4 = pnand %p307_p2, %p592_p3 }
  0x1a   : > { %s131_s16 = sshll.u32 %s120_s15, 4  ;;  %p288_p5 = scmp.ge.s32.totalorder %s519_s14, 1  ;;  %s132_s16 = int_to_ptr.vmem [resolvable:$true] %s131_s16 }
  0x1b   : > { %s117_s21 = scalar_lea.sflag [#allocation3], %s116_s30  ;;  %p389_p6 = pneg %p634_p4 }
  0x1c   : > { %s400_s18 = scalar_lea.vmem %s132_s16, 128  ;;  %s521_s22 = smov [#allocation2]  }
  0x1d   : > { %p401_p8 = scmp.ne.s32.totalorder %s132_s16, %s400_s18  ;;  %s405_s23 = sshll.u32 %s521_s22, 4  ;;  %s406_s23 = int_to_ptr.vmem [resolvable:$false] %s405_s23 }
  0x1e   : > { %s407_s25 = scalar_lea.vmem %s406_s23, 256  ;;  %p408_p11 = scmp.lt.s32.totalorder %s132_s16, %s406_s23 }
  0x1f   : > { %p403_p9 = pnand %p401_p8, %p389_p6  ;;  %p409_p12 = scmp.lt.s32.totalorder %s407_s25, %s400_s18 }
  0x21   : > { %p404_p10 = pneg %p403_p9  ;;  %p410_p3 = por %p409_p12, %p408_p11 }
  0x23   : > { %p411_p2 = pnand %p410_p3, %p404_p10 }
  0x25   : > { %414 = shalt.err (!%p411_p2)
}
  0x26   : > { %s522_s20 = smov 128   ;;  %s523_s30 = smov 64  }
  0x27   : > { %s524_s2 = smov 4   ;;  %p139_p0 = scmp.lt.s32.totalorder %s519_s14, 3 }
  0x28   : > { %302 = dma.hbm_to_vmem [thread:$0]  (!%p634_p4), %s130_s9, 128, %s132_s16, %s117_s21, %s522_s20, %s523_s30, %s524_s2  }
  0x29   : > { %p140_p6 = pnand %p288_p5, %p139_p0 }
  0x2a   : > { %s145_s3 = sand.u32 (!%p140_p6), 1, %s503_s10  }
  0x2b   : > { %143 = sbr.rel (%p140_p6) target bundleno = 76 (0x4c), region = 24  ;;  %s289_s4 = sshll.u32 (!%p140_p6), %s145_s3, 3 }
  0x2c   : > { %s146_s5 = scalar_lea.sflag (!%p140_p6), [#allocation3], %s145_s3  ;;  %s149_s15 = scalar_lea.vmem (!%p140_p6), [#allocation2], %s289_s4 }
  0x30   : > { %478 = dma.done.wait (%p600_p7), %s146_s5, 128  }
  0x31   : > { %480 = vsyncadd (%p600_p7), %s146_s5, 4294967168  ;;  %s165_s19 = sand.u32 1, %s491_s7   ;;  %s292_s16 = sshll.u32 %s511_s12, 6  ;;  %v171_v0 = vld [vmem:[%s149_s15] sm:$0xff]  }
  0x32   : > { %s290_s9 = sshll.u32 %s165_s19, 3  ;;  %s656_s25 = scalar_lea.hbm %s716_s1, %s292_s16 }
  0x33   : > { %s167_s21 = scalar_lea.vmem [#allocation5], %s290_s9  ;;  %s660_s24 = scalar_lea.sflag [#allocation4], %s165_s19 }
  0x34   : > { %s192_s18 = sshll.u32 %s167_s21, 4  ;;  %173 = vst [vmem:[%s167_s21] sm:$0xff] %v171_v0   ;;  %s525_s12 = smov [#allocation5]   ;;  %s658_s18 = int_to_ptr.vmem [resolvable:$true] %s192_s18 }
  0x35   : > { %s415_s20 = scalar_lea.vmem %s658_s18, 128  ;;  %s419_s30 = sshll.u32 %s525_s12, 4  ;;  %s420_s30 = int_to_ptr.vmem [resolvable:$false] %s419_s30 }
  0x36   : > { %p416_p7 = scmp.ne.s32.totalorder %s658_s18, %s415_s20  ;;  %s421_s2 = scalar_lea.vmem %s420_s30, 256 }
  0x37   : > { %p422_p5 = scmp.lt.s32.totalorder %s658_s18, %s420_s30  ;;  %p423_p8 = scmp.lt.s32.totalorder %s421_s2, %s415_s20 }
  0x38   : > { %p417_p0 = pnand %p416_p7, %p615_p13 }
  0x39   : > { %p424_p9 = por %p423_p8, %p422_p5 }
  0x3a   : > { %p418_p4 = pneg %p417_p0 }
  0x3c   : > { %p425_p10 = pnand %p424_p9, %p418_p4 }
  0x3e   : > { %428 = shalt.err (!%p425_p10)
}
  0x3f   : > { %s429_s3 = scalar_lea.hbm %s656_s25, 128  ;;  %s433_s15 = scalar_lea.hbm %s716_s1, 256 }
  0x40   : > { %p430_p11 = scmp.ne.s32.totalorder %s656_s25, %s429_s3  ;;  %p434_p2 = scmp.lt.s32.totalorder %s656_s25, %s716_s1 }
  0x41   : > { %p435_p6 = scmp.lt.s32.totalorder %s433_s15, %s429_s3 }
  0x42   : > { %p431_p12 = pnand %p430_p11, %p615_p13 }
  0x43   : > { %p436_p7 = por %p435_p6, %p434_p2 }
  0x44   : > { %p432_p3 = pneg %p431_p12 }
  0x46   : > { %p437_p0 = pnand %p436_p7, %p432_p3 }
  0x48   : > { %440 = shalt.err (!%p437_p0)
}
  0x49   : > { %s526_s16 = smov 64   ;;  %s527_s21 = smov 128  }
  0x4a   : > { %s528_s22 = smov 4  }
  0x4b   : > { %297 = dma.vmem_to_hbm [thread:$0]  (%p615_p13), %s658_s18, 128, %s656_s25, %s660_s24, %s526_s16, %s527_s21, %s528_s22  }
  0x4c PF: > { %s207_s23 = sand.u32 1, %s487_s6   ;;  %p722_p4 = scmp.ge.s32.totalorder %s519_s14, 2 }
  0x4d   : > { %s208_s20 = scalar_lea.sflag [#allocation4], %s207_s23 }
  0x4e   : > { %p304_p5 = pnand %p722_p4, %p620_p1 }
  0x50   : > { %p305_p8 = pneg %p304_p5 }
  0x52   : > { %482 = dma.done.wait (%p305_p8), %s208_s20, 128  }
  0x53   : > { %484 = vsyncadd (%p305_p8), %s208_s20, 4294967168  ;;  %s17_s14 = sadd.s32 1, %s519_s14   ;;  %s723_s6 = smov %s491_s7 }
  0x54   : > { %p14_p9 = scmp.ge.s32.totalorder %s17_s14, 4   ;;  %s724_s7 = smov %s495_s8 }
  0x55   : > { %s725_s8 = smov %s609_s27  ;;  %s726_s9 = smov %s503_s10 }
  0x56   : > { %s727_s10 = smov %s507_s11  ;;  %s728_s11 = smov %s606_s26 }
  0x57   : > { %s729_s12 = smov %s515_s13  ;;  %s730_s13 = smov %s732_s17 }
  0x58   :  { %16 = sbr.rel (!%p14_p9) target bundleno = 8 (0x8), region = 69 }
  0x5d   :  { %213 = vsyncpa [#allocation3], 1 }
  0x5e   :  { %215 = vsyncpa [#allocation3 + $0x1], 1 }
  0x5f   :  { %216 = vsyncpa [#allocation4], 1 }
  0x60   :  { %218 = vsyncpa [#allocation4 + $0x1], 1 }

</bundles_post_ra>
